<compile_context>
chip_gen: v7x
topology: tpu7x:2x2x1
jax: 0.10.0
libtpu: 0.0.40
codegen_flags: <defaults>
</compile_context>

<pallas_src>
import jax
import jax.numpy as jnp
from jax.experimental import pallas as pl
from jax.experimental.pallas import tpu as pltpu


# ---------------------------------------------------------------------------
# Parameter-only precompute (plain JAX glue): mirrors get_theta_matrix /
# generate_grids / interpolate weight math of the PyTorch module exactly.
# ---------------------------------------------------------------------------
def _grid_and_weights(theta8, H, W):
    # get_theta_matrix: append the remaining identity element (1.0) -> (3, 3)
    theta9 = jnp.concatenate(
        [theta8.astype(jnp.float32), jnp.ones((1,), jnp.float32)]
    )
    M = theta9.reshape(3, 3)

    # generate_grids (including the original code's W*H -> (H, W) reshape quirk)
    x = jnp.linspace(-1.0, 1.0, W)
    y = jnp.linspace(-1.0, 1.0, H)
    x_g, y_g = jnp.meshgrid(x, y, indexing="ij")                  # (W, H)
    ones = jnp.ones_like(x_g.reshape(-1))
    grid = jnp.stack([x_g.reshape(-1), y_g.reshape(-1), ones])    # (3, W*H)
    bg = (M @ grid).reshape(3, H, W)
    omega = bg[2]
    x_s = bg[0] / omega
    y_s = bg[1] / omega

    # interpolate: weight / index math (keeps the (max-1) scaling and the
    # original code's use of y0 in the 'b' weight)
    max_y = float(H - 1)
    max_x = float(W - 1)
    xc = 0.5 * ((x_s + 1.0) * (max_x - 1.0))
    yc = 0.5 * ((y_s + 1.0) * (max_y - 1.0))
    x0 = jnp.floor(xc).astype(jnp.int32)
    x1 = x0 + 1
    y0 = jnp.floor(yc).astype(jnp.int32)
    y1 = y0 + 1
    x0 = jnp.clip(x0, 0, int(max_x))
    x1 = jnp.clip(x1, 0, int(max_x))
    y0 = jnp.clip(y0, 0, int(max_y))
    y1 = jnp.clip(y1, 0, int(max_y))
    x0f, x1f = x0.astype(jnp.float32), x1.astype(jnp.float32)
    y0f, y1f = y0.astype(jnp.float32), y1.astype(jnp.float32)
    wa = (x1f - xc) * (y1f - yc)
    wb = (x1f - xc) * (y1f - y0f)      # quirk of original: uses y0, not yc
    wc = (xc - x0f) * (y1f - yc)
    wd = (xc - x0f) * (yc - y0f)
    return x0, x1, y0, y1, wa, wb, wc, wd


def _sampling_matrix_T(theta8, H, W):
    """Dense (HW_in, HW_out) matrix ST so that out_flat = img_flat @ ST."""
    # TODO(synk): only the output_size=None path is materialized here; a
    # non-None output_size would only change the output grid extents.
    x0, x1, y0, y1, wa, wb, wc, wd = _grid_and_weights(theta8, H, W)
    HW = H * W

    def oh(yy, xx):
        flat = (yy * W + xx).reshape(-1)
        return jax.nn.one_hot(flat, HW, dtype=jnp.float32)   # (HW_out, HW_in)

    # TODO(synk): ST is kept in f32; bf16 would halve the dominant HBM bytes
    # but pushes error vs. the f32 gather reference toward ~1e-3.
    S = (wa.reshape(-1, 1) * oh(y0, x0)     # Ia = img[y0, x0]
         + wb.reshape(-1, 1) * oh(y1, x0)   # Ib = img[y1, x0]
         + wc.reshape(-1, 1) * oh(y0, x1)   # Ic = img[y0, x1]
         + wd.reshape(-1, 1) * oh(y1, x1))  # Id = img[y1, x1]
    return S.T                               # (HW_in, HW_out)


# ---------------------------------------------------------------------------
# Pallas kernel: a single MXU matmul per grid step (2D or leading-1 3D blocks)
# ---------------------------------------------------------------------------
def _pers_matmul_kernel(x_ref, st_ref, o_ref):
    x = x_ref[...]
    st = st_ref[...]
    x2 = x.reshape(x.shape[-2:])
    st2 = st.reshape(st.shape[-2:])
    y = jnp.dot(x2, st2, preferred_element_type=jnp.float32)
    o_ref[...] = y.reshape(o_ref.shape).astype(o_ref.dtype)


def _largest_aligned_divisor(total, quantum, limit):
    """Largest divisor of `total` that is a multiple of `quantum` and <= limit.
    Falls back to `total` (full extent block) if no such divisor exists."""
    if total <= limit:
        return total
    best = None
    d = quantum
    while d <= limit:
        if total % d == 0:
            best = d
        d += quantum
    return best if best is not None else total


# ---------------------------------------------------------------------------
# Shared-theta fast path:  O = X @ ST,  X: (M, K), ST: (K, TMHW)
# ---------------------------------------------------------------------------
def _pers_shared_pallas(x_flat, st, budget=2 << 20):
    M, K = x_flat.shape
    TMHW = st.shape[1]
    elt = 4
    lim_n = max(128, (budget // (K * elt)) // 128 * 128)
    tile_n = _largest_aligned_divisor(TMHW, 128, lim_n)
    lim_m = max(8, (budget // (max(K, tile_n) * elt)) // 8 * 8)
    tile_m = _largest_aligned_divisor(M, 8, lim_m)
    grid = (M // tile_m, TMHW // tile_n)
    return pl.pallas_call(
        _pers_matmul_kernel,
        out_shape=jax.ShapeDtypeStruct((M, TMHW), jnp.float32),
        grid_spec=pltpu.PrefetchScalarGridSpec(
            num_scalar_prefetch=0,
            grid=grid,
            in_specs=[
                pl.BlockSpec((tile_m, K), lambda i, j: (i, 0)),
                pl.BlockSpec((K, tile_n), lambda i, j: (0, j)),
            ],
            out_specs=pl.BlockSpec((tile_m, tile_n), lambda i, j: (i, j)),
        ),
        compiler_params=pltpu.CompilerParams(
            dimension_semantics=("parallel", "parallel")),
    )(x_flat, st)


# ---------------------------------------------------------------------------
# Per-channel-theta path:  O[c] = X[c] @ ST[c]  (merged tm columns)
# ---------------------------------------------------------------------------
def _pers_per_channel_pallas(x_cnh, st_all, tm, budget=2 << 20):
    C, N, HW = x_cnh.shape
    TMHW = tm * HW
    elt = 4

    if TMHW % 128 == 0:
        # Lane-dense flat output written directly in its final layout.
        lim_c = max(128, (budget // (HW * elt)) // 128 * 128)
        col = _largest_aligned_divisor(TMHW, 128, lim_c)
        n_col = TMHW // col
        out = pl.pallas_call(
            _pers_matmul_kernel,
            out_shape=jax.ShapeDtypeStruct((N, C * TMHW), jnp.float32),
            grid_spec=pltpu.PrefetchScalarGridSpec(
                num_scalar_prefetch=0,
                grid=(C, n_col),
                in_specs=[
                    pl.BlockSpec((1, N, HW), lambda c, j: (c, 0, 0)),
                    pl.BlockSpec((1, HW, col), lambda c, j: (c, 0, j)),
                ],
                out_specs=pl.BlockSpec((N, col),
                                       lambda c, j: (0, c * n_col + j)),
            ),
            compiler_params=pltpu.CompilerParams(
                dimension_semantics=("parallel", "parallel")),
        )(x_cnh, st_all)
        return out, True

    # Fallback for lane-unaligned tm*HW: full-extent blocks, channel-major out.
    out = pl.pallas_call(
        _pers_matmul_kernel,
        out_shape=jax.ShapeDtypeStruct((C, N, TMHW), jnp.float32),
        grid_spec=pltpu.PrefetchScalarGridSpec(
            num_scalar_prefetch=0,
            grid=(C,),
            in_specs=[
                pl.BlockSpec((1, N, HW), lambda c: (c, 0, 0)),
                pl.BlockSpec((1, HW, TMHW), lambda c: (c, 0, 0)),
            ],
            out_specs=pl.BlockSpec((1, N, TMHW), lambda c: (c, 0, 0)),
        ),
        compiler_params=pltpu.CompilerParams(
            dimension_semantics=("parallel",)),
    )(x_cnh, st_all)
    return out, False


# ---------------------------------------------------------------------------
# Full forward (wrapper): NCHW in, (N, C*tm, H, W) out, like the nn.Module.
# ---------------------------------------------------------------------------
def perspective_layer_forward(inp, wt_pers, tm, shared_thetas=None):
    """inp: (N, C, H, W), wt_pers: (tm, C, 8). Returns (N, C*tm, H, W)."""
    N, C, H, W = inp.shape
    HW = H * W
    TMHW = tm * HW

    # Deduplicate ST when thetas are shared across channels (true for the
    # module's default init, which tiles thetas over C).
    if shared_thetas is None:
        try:
            shared_thetas = bool(jnp.all(wt_pers == wt_pers[:, :1]))
        except Exception:   # abstract values under tracing -> general path
            shared_thetas = False

    if shared_thetas:
        thetas = wt_pers[:, 0, :]                                  # (tm, 8)
        st = jax.vmap(lambda th: _sampling_matrix_T(th, H, W))(thetas)
        # (tm, HW, HW) -> (HW, tm*HW); column t*HW + j -> transform t, pixel j
        st_merged = jnp.transpose(st, (1, 0, 2)).reshape(HW, TMHW)
        x_flat = inp.reshape(N * C, HW)                            # pure reshape
        out = _pers_shared_pallas(x_flat, st_merged)               # (N*C, tm*HW)
        # Row n*C + c, column t*HW + j  ->  channel c*tm + t: pure reshape.
        return out.reshape(N, C * tm, H, W)

    thetas = jnp.transpose(wt_pers, (1, 0, 2)).reshape(C * tm, 8)  # (c, t) order
    st = jax.vmap(lambda th: _sampling_matrix_T(th, H, W))(thetas) # (C*tm,HW,HW)
    # Merge the tm matrices of one channel along columns -> (C, HW, tm*HW).
    st_all = (st.reshape(C, tm, HW, HW)
                .transpose(0, 2, 1, 3)
                .reshape(C, HW, TMHW))
    x_cnh = jnp.transpose(inp, (1, 0, 2, 3)).reshape(C, N, HW)
    out, flat = _pers_per_channel_pallas(x_cnh, st_all, tm)
    if flat:
        # (N, C*tm*HW) is already the final channel ordering: pure reshape.
        return out.reshape(N, C * tm, H, W)
    return jnp.transpose(out, (1, 0, 2)).reshape(N, C * tm, H, W)


# ---------------------------------------------------------------------------
# Pure-JAX reference (gather based), mirrors the PyTorch code directly.
# ---------------------------------------------------------------------------
def _reference_channel(img, theta8, H, W):
    # img: (N, H, W)
    x0, x1, y0, y1, wa, wb, wc, wd = _grid_and_weights(theta8, H, W)
    Ia = img[:, y0, x0]
    Ib = img[:, y1, x0]
    Ic = img[:, y0, x1]
    Id = img[:, y1, x1]
    return wa[None] * Ia + wb[None] * Ib + wc[None] * Ic + wd[None] * Id


def reference_forward(inp, wt_pers, tm):
    N, C, H, W = inp.shape
    chans = []
    for c in range(C):
        for t in range(tm):
            chans.append(_reference_channel(inp[:, c], wt_pers[t, c], H, W))
    return jnp.stack(chans, axis=1)          # (N, C*tm, H, W)


if __name__ == "__main__":
    key = jax.random.PRNGKey(0)
    k_inp, k_theta, k_theta2 = jax.random.split(key, 3)

    # small shapes consistent with the module
    N, C, H, W, tm = 2, 4, 16, 16, 2

    inp = jax.random.normal(k_inp, (N, C, H, W), dtype=jnp.float32)

    # Module-default structure: identity-ish thetas tiled across channels
    # (exercises the deduplicated, single-matmul shared-ST fast path).
    base = jnp.array([1.0, 0.0, 0.0, 0.0, 1.0, 0.0, 0.0, 0.0], dtype=jnp.float32)
    pert = 0.1 * jax.random.uniform(k_theta, (tm, 8), minval=-1.0, maxval=1.0)
    thetas = base[None, :] + pert                               # (tm, 8)
    wt_pers_shared = jnp.tile(thetas[:, None, :], (1, C, 1))    # (tm, C, 8)

    out = perspective_layer_forward(inp, wt_pers_shared, tm)
    out = jax.block_until_ready(out)
    assert out.shape == (N, C * tm, H, W), out.shape
    ref = reference_forward(inp, wt_pers_shared, tm)
    if not jnp.allclose(out, ref, atol=1e-4, rtol=1e-4):
        raise AssertionError("Pallas output mismatch (shared-theta path)")

    # Per-channel-distinct thetas exercise the general (per-channel ST) path.
    pert2 = 0.1 * jax.random.uniform(k_theta2, (tm, C, 8), minval=-1.0, maxval=1.0)
    wt_pers_dist = base[None, None, :] + pert2                  # (tm, C, 8)
    out2 = jax.block_until_ready(perspective_layer_forward(inp, wt_pers_dist, tm))
    ref2 = reference_forward(inp, wt_pers_dist, tm)
    if not jnp.allclose(out2, ref2, atol=1e-4, rtol=1e-4):
        raise AssertionError("Pallas output mismatch (per-channel-theta path)")

    print("KERNEL_OK")
</pallas_src>

<mosaic_0001>
module attributes {stable_mosaic.version = 11 : i64} {
  func.func @_pers_matmul_kernel(%arg0: i32, %arg1: i32, %arg2: memref<8x256xf32, #tpu.memory_space<vmem>>, %arg3: memref<256x512xf32, #tpu.memory_space<vmem>>, %arg4: memref<8x512xf32, #tpu.memory_space<vmem>>) attributes {dimension_semantics = [#tpu.dimension_semantics<parallel>, #tpu.dimension_semantics<parallel>], iteration_bounds = array<i64: 1, 1>, scalar_prefetch = 0 : i64, scratch_operands = 0 : i64, tpu.core_type = #tpu.core_type<tc>, window_params = [{transform_indices = @transform_0, window_bounds = array<i64: 8, 256>}, {transform_indices = @transform_1, window_bounds = array<i64: 256, 512>}, {transform_indices = @transform_2, window_bounds = array<i64: 8, 512>}]} {
    %c0 = arith.constant 0 : index
    %c0_0 = arith.constant 0 : index
    %0 = vector.load %arg2[%c0, %c0_0] : memref<8x256xf32, #tpu.memory_space<vmem>>, vector<8x256xf32>
    %c0_1 = arith.constant 0 : index
    %c0_2 = arith.constant 0 : index
    %1 = vector.load %arg3[%c0_1, %c0_2] : memref<256x512xf32, #tpu.memory_space<vmem>>, vector<256x512xf32>
    %cst = arith.constant dense<0.000000e+00> : vector<8x512xf32>
    %2 = tpu.matmul %0, %1, %cst {dimension_numbers = #tpu.dot_dimension_numbers<[1], [0], [0], [1], [0, 0, 1, 1], [], []>} : vector<8x256xf32>, vector<256x512xf32>, vector<8x512xf32> -> vector<8x512xf32>
    %c0_3 = arith.constant 0 : index
    %c0_4 = arith.constant 0 : index
    %3 = vector.load %arg4[%c0_3, %c0_4] : memref<8x512xf32, #tpu.memory_space<vmem>>, vector<8x512xf32>
    tpu.vector_store %arg4[%c0_3, %c0_4], %2 {strides = array<i32>} : memref<8x512xf32, #tpu.memory_space<vmem>>, vector<8x512xf32>,
    return
  }
  func.func @transform_0(%arg0: i32, %arg1: i32) -> (i32, i32) {
    %c0_i32 = arith.constant 0 : i32
    %c0_i32_0 = arith.constant 0 : i32
    return %arg0, %c0_i32 : i32, i32
  }
  func.func @transform_1(%arg0: i32, %arg1: i32) -> (i32, i32) {
    %c0_i32 = arith.constant 0 : i32
    %c0_i32_0 = arith.constant 0 : i32
    return %c0_i32, %arg1 : i32, i32
  }
  func.func @transform_2(%arg0: i32, %arg1: i32) -> (i32, i32) {
    %c0_i32 = arith.constant 0 : i32
    return %arg0, %arg1 : i32, i32
  }
}

</mosaic_0001>

<bundles_post_ra>
// kernel: tpu_custom_call.1
= control target key start
LH: loop header
LB: loop body
LE: loop exit
PB: predicated region body
PF: predicated region fallthrough
CT: control target
= control target key end

     0   :  { %7 = vsyncpa [#allocation3], 0  ;;  %s598_s0 = inlined_call_operand.hbm [shape: f32[8,256], index: 0, kind: input, shape index: {}]   ;;  %s599_s1 = inlined_call_operand.hbm [shape: f32[256,512], index: 1, kind: input, shape index: {}]   ;;  %s600_s2 = inlined_call_operand.hbm [shape: f32[8,512], index: 2, kind: output, shape index: {}]  }
   0x1   :  { %8 = vsyncpa [#allocation6], 0 }
   0x2   :  { %9 = vsyncpa [#allocation4], 0  ;;  %s535_s9 = smov [#allocation2]   ;;  %s536_s11 = smov [#allocation5]  }
   0x3   :  { %s16_s10 = sshll.u32 %s535_s9, 4  ;;  %s25_s12 = sshll.u32 %s536_s11, 4  ;;  %s17_s10 = int_to_ptr.vmem [resolvable:$true] %s16_s10  ;;  %s555_s12 = int_to_ptr.vmem [resolvable:$true] %s25_s12 }
   0x4   :  { %s463_s15 = scalar_lea.hbm %s598_s0, 256 }
   0x5   :  { %p464_p0 = scmp.ne.s32.totalorder %s598_s0, %s463_s15  ;;  %p467_p1 = scmp.lt.u32.totalorder %s463_s15, %s598_s0 }
   0x7   :  { %p469_p2 = pnand %p467_p1, %p464_p0 }
   0x9   :  { %472 = shalt.err (!%p469_p2)
}
   0xa   :  { %s473_s20 = scalar_lea.vmem %s17_s10, 256  ;;  %p478_p4 = scmp.lt.s32.totalorder %s17_s10, %s17_s10 }
   0xb   :  { %p474_p3 = scmp.ne.s32.totalorder %s17_s10, %s473_s20  ;;  %p479_p5 = scmp.lt.s32.totalorder %s473_s20, %s473_s20 }
   0xd   :  { %p480_p6 = por %p479_p5, %p478_p4 }
   0xf   :  { %p481_p7 = pnand %p480_p6, %p474_p3 }
  0x11   :  { %484 = shalt.err (!%p481_p7)
}
  0x12   :  { %19 = dma.hbm_to_vmem [thread:$0]  %s598_s0, 256, %s17_s10, [#allocation3]  }
  0x13   :  { %s485_s25 = scalar_lea.hbm %s599_s1, 16384 }
  0x14   :  { %p486_p8 = scmp.ne.s32.totalorder %s599_s1, %s485_s25  ;;  %p489_p9 = scmp.lt.u32.totalorder %s485_s25, %s599_s1 }
  0x16   :  { %p491_p10 = pnand %p489_p9, %p486_p8 }
  0x18   :  { %494 = shalt.err (!%p491_p10)
}
  0x19   :  { %s495_s30 = scalar_lea.vmem %s555_s12, 16384  ;;  %p500_p12 = scmp.lt.s32.totalorder %s555_s12, %s555_s12 }
  0x1a   :  { %p496_p11 = scmp.ne.s32.totalorder %s555_s12, %s495_s30  ;;  %p501_p13 = scmp.lt.s32.totalorder %s495_s30, %s495_s30 }
  0x1c   :  { %p502_p0 = por %p501_p13, %p500_p12 }
  0x1e   :  { %p503_p1 = pnand %p502_p0, %p496_p11 }
  0x20   :  { %506 = shalt.err (!%p503_p1)
}
  0x21   :  { %s537_s0 = smov 512   ;;  %s538_s3 = smov 32  }
  0x22   :  { %31 = dma.hbm_to_vmem [thread:$0]  %s599_s1, 16384, %s555_s12, [#allocation6], %s537_s0, %s537_s0, %s538_s3  }
  0x23   :  { %529 = dma.done.wait [#allocation3], 256  }
  0x24   :  { %530 = vsyncadd [#allocation3], 4294967040 }
  0x25   :  { %531 = dma.done.wait [#allocation6], 16384  }
  0x26   :  { %532 = vsyncadd [#allocation6], 4294950912  ;;  %v41_v0 = vld [vmem:[#allocation5 + $0x8] sm:$0xff]  ;;  %v43_v2 = vld [vmem:[#allocation5 + $0x18] sm:$0xff]  ;;  %s539_s1 = smov [#allocation7]  }
  0x27   :  { %v45_v1 = vld [vmem:[#allocation5 + $0x28] sm:$0xff]  ;;  %v47_v4 = vld [vmem:[#allocation5 + $0x38] sm:$0xff]  ;;  %v40_v5 = vld [vmem:[#allocation5] sm:$0xff]  ;;  %s320_s6 = sshll.u32 %s539_s1, 4  ;;  %s321_s6 = int_to_ptr.vmem [resolvable:$true] %s320_s6 }
  0x28   :  { %v330_v3 = vpack.c.bf16 %v45_v1, %v41_v0  ;;  %v44_v6 = vld [vmem:[#allocation5 + $0x20] sm:$0xff]  ;;  %v394_v7 = vpack.c.bf16 %v47_v4, %v43_v2  ;;  %v42_v9 = vld [vmem:[#allocation5 + $0x10] sm:$0xff]  ;;  %v49_v11 = vld [vmem:[#allocation5 + $0x48] sm:$0xff]  ;;  %s507_s7 = scalar_lea.vmem %s321_s6, 512  ;;  %p512_p3 = scmp.lt.s32.totalorder %s321_s6, %s321_s6 }
  0x29   :  { %v332_v8 = vpack.c.bf16 %v44_v6, %v40_v5  ;;  %v46_v10 = vld [vmem:[#allocation5 + $0x30] sm:$0xff]  ;;  %v53_v13 = vld [vmem:[#allocation5 + $0x68] sm:$0xff]  ;;  %v51_v14 = vld [vmem:[#allocation5 + $0x58] sm:$0xff]  ;;  %p508_p2 = scmp.ne.s32.totalorder %s321_s6, %s507_s7  ;;  %p513_p4 = scmp.lt.s32.totalorder %s507_s7, %s507_s7 }
  0x2a   :  { %331 = vmatprep.subr.bf16.mxu0 %v330_v3  ;;  %v396_v12 = vpack.c.bf16 %v46_v10, %v42_v9  ;;  %v55_v15 = vld [vmem:[#allocation5 + $0x78] sm:$0xff]  ;;  %395 = vmatprep.subr.bf16.mxu1 %v394_v7  ;;  %v334_v16 = vpack.c.bf16 %v53_v13, %v49_v11  ;;  %v48_v18 = vld [vmem:[#allocation5 + $0x40] sm:$0xff]  ;;  %v50_v20 = vld [vmem:[#allocation5 + $0x50] sm:$0xff] }
  0x2b   :  { %333 = vmatpush1.bf16.msra.mxu0 %v332_v8  ;;  %v398_v17 = vpack.c.bf16 %v55_v15, %v51_v14  ;;  %v52_v19 = vld [vmem:[#allocation5 + $0x60] sm:$0xff]  ;;  %v54_v22 = vld [vmem:[#allocation5 + $0x70] sm:$0xff]  ;;  %v57_v23 = vld [vmem:[#allocation5 + $0x88] sm:$0xff]  ;;  %p514_p5 = por %p513_p4, %p512_p3 }
  0x2c   :  { %397 = vmatpush1.bf16.msra.mxu1 %v396_v12  ;;  %v336_v21 = vpack.c.bf16 %v52_v19, %v48_v18  ;;  %v61_v24 = vld [vmem:[#allocation5 + $0xa8] sm:$0xff]  ;;  %335 = vmatprep.subr.bf16.mxu0 %v334_v16  ;;  %v400_v25 = vpack.c.bf16 %v54_v22, %v50_v20  ;;  %v59_v27 = vld [vmem:[#allocation5 + $0x98] sm:$0xff]  ;;  %v56_v29 = vld [vmem:[#allocation5 + $0x80] sm:$0xff] }
  0x2d   :  { %399 = vmatprep.subr.bf16.mxu1 %v398_v17  ;;  %v338_v26 = vpack.c.bf16 %v61_v24, %v57_v23  ;;  %v63_v28 = vld [vmem:[#allocation5 + $0xb8] sm:$0xff]  ;;  %v60_v31 = vld [vmem:[#allocation5 + $0xa0] sm:$0xff]  ;;  %v58_v32 = vld [vmem:[#allocation5 + $0x90] sm:$0xff]  ;;  %p515_p6 = pnand %p514_p5, %p508_p2 }
  0x2e   :  { %v402_v30 = vpack.c.bf16 %v63_v28, %v59_v27  ;;  %v62_v33 = vld [vmem:[#allocation5 + $0xb0] sm:$0xff]  ;;  %v340_v34 = vpack.c.bf16 %v60_v31, %v56_v29  ;;  %v65_v35 = vld [vmem:[#allocation5 + $0xc8] sm:$0xff]  ;;  %v67_v37 = vld [vmem:[#allocation5 + $0xd8] sm:$0xff] }
  0x2f   :  { %337 = vmatpush1.bf16.msra.mxu0 %v336_v21  ;;  %v69_v36 = vld [vmem:[#allocation5 + $0xe8] sm:$0xff]  ;;  %v404_v38 = vpack.c.bf16 %v62_v33, %v58_v32  ;;  %v71_v40 = vld [vmem:[#allocation5 + $0xf8] sm:$0xff]  ;;  %v64_v41 = vld [vmem:[#allocation5 + $0xc0] sm:$0xff] }
  0x30   :  { %401 = vmatpush1.bf16.msra.mxu1 %v400_v25  ;;  %339 = vmatprep.subr.bf16.mxu0 %v338_v26  ;;  %v342_v39 = vpack.c.bf16 %v69_v36, %v65_v35  ;;  %v68_v42 = vld [vmem:[#allocation5 + $0xe0] sm:$0xff]  ;;  %v406_v43 = vpack.c.bf16 %v71_v40, %v67_v37  ;;  %v66_v44 = vld [vmem:[#allocation5 + $0xd0] sm:$0xff]  ;;  %v73_v46 = vld [vmem:[#allocation5 + $0x108] sm:$0xff] }
  0x31   :  { %403 = vmatprep.subr.bf16.mxu1 %v402_v30  ;;  %v70_v45 = vld [vmem:[#allocation5 + $0xf0] sm:$0xff]  ;;  %v77_v47 = vld [vmem:[#allocation5 + $0x128] sm:$0xff]  ;;  %v75_v48 = vld [vmem:[#allocation5 + $0x118] sm:$0xff]  ;;  %v344_v50 = vpack.c.bf16 %v68_v42, %v64_v41 }
  0x32   :  { %v79_v49 = vld [vmem:[#allocation5 + $0x138] sm:$0xff]  ;;  %v408_v51 = vpack.c.bf16 %v70_v45, %v66_v44  ;;  %v346_v52 = vpack.c.bf16 %v77_v47, %v73_v46  ;;  %v72_v53 = vld [vmem:[#allocation5 + $0x100] sm:$0xff]  ;;  %v74_v55 = vld [vmem:[#allocation5 + $0x110] sm:$0xff] }
  0x33   :  { %341 = vmatpush1.bf16.msra.mxu0 %v340_v34  ;;  %v76_v54 = vld [vmem:[#allocation5 + $0x120] sm:$0xff]  ;;  %v410_v56 = vpack.c.bf16 %v79_v49, %v75_v48  ;;  %v78_v57 = vld [vmem:[#allocation5 + $0x130] sm:$0xff]  ;;  %v81_v58 = vld [vmem:[#allocation5 + $0x148] sm:$0xff] }
  0x34   :  { %405 = vmatpush1.bf16.msra.mxu1 %v404_v38  ;;  %343 = vmatprep.subr.bf16.mxu0 %v342_v39  ;;  %v85_v59 = vld [vmem:[#allocation5 + $0x168] sm:$0xff]  ;;  %v83_v60 = vld [vmem:[#allocation5 + $0x158] sm:$0xff]  ;;  %v348_v62 = vpack.c.bf16 %v76_v54, %v72_v53  ;;  %v412_v63 = vpack.c.bf16 %v78_v57, %v74_v55  ;;  %v80_v1 = vld [vmem:[#allocation5 + $0x140] sm:$0xff] }
  0x35   :  { %407 = vmatprep.subr.bf16.mxu1 %v406_v43  ;;  %v87_v61 = vld [vmem:[#allocation5 + $0x178] sm:$0xff]  ;;  %v350_v0 = vpack.c.bf16 %v85_v59, %v81_v58  ;;  %v84_v2 = vld [vmem:[#allocation5 + $0x160] sm:$0xff]  ;;  %v82_v3 = vld [vmem:[#allocation5 + $0x150] sm:$0xff] }
  0x36   :  { %v414_v4 = vpack.c.bf16 %v87_v61, %v83_v60  ;;  %v86_v5 = vld [vmem:[#allocation5 + $0x170] sm:$0xff]  ;;  %v89_v6 = vld [vmem:[#allocation5 + $0x188] sm:$0xff]  ;;  %v91_v8 = vld [vmem:[#allocation5 + $0x198] sm:$0xff]  ;;  %v352_v10 = vpack.c.bf16 %v84_v2, %v80_v1 }
  0x37   :  { %345 = vmatpush1.bf16.msra.mxu0 %v344_v50  ;;  %v93_v7 = vld [vmem:[#allocation5 + $0x1a8] sm:$0xff]  ;;  %v95_v9 = vld [vmem:[#allocation5 + $0x1b8] sm:$0xff]  ;;  %v416_v11 = vpack.c.bf16 %v86_v5, %v82_v3  ;;  %v88_v13 = vld [vmem:[#allocation5 + $0x180] sm:$0xff] }
  0x38   :  { %409 = vmatpush1.bf16.msra.mxu1 %v408_v51  ;;  %347 = vmatprep.subr.bf16.mxu0 %v346_v52  ;;  %v354_v12 = vpack.c.bf16 %v93_v7, %v89_v6  ;;  %v92_v14 = vld [vmem:[#allocation5 + $0x1a0] sm:$0xff]  ;;  %v90_v15 = vld [vmem:[#allocation5 + $0x190] sm:$0xff]  ;;  %v418_v16 = vpack.c.bf16 %v95_v9, %v91_v8  ;;  %v97_v18 = vld [vmem:[#allocation5 + $0x1c8] sm:$0xff] }
  0x39   :  { %411 = vmatprep.subr.bf16.mxu1 %v410_v56  ;;  %v94_v17 = vld [vmem:[#allocation5 + $0x1b0] sm:$0xff]  ;;  %v101_v19 = vld [vmem:[#allocation5 + $0x1e8] sm:$0xff]  ;;  %v99_v20 = vld [vmem:[#allocation5 + $0x1d8] sm:$0xff]  ;;  %v356_v22 = vpack.c.bf16 %v92_v14, %v88_v13 }
  0x3a   :  { %v103_v21 = vld [vmem:[#allocation5 + $0x1f8] sm:$0xff]  ;;  %v420_v23 = vpack.c.bf16 %v94_v17, %v90_v15  ;;  %v358_v24 = vpack.c.bf16 %v101_v19, %v97_v18  ;;  %v96_v25 = vld [vmem:[#allocation5 + $0x1c0] sm:$0xff]  ;;  %v98_v27 = vld [vmem:[#allocation5 + $0x1d0] sm:$0xff] }
  0x3b   :  { %349 = vmatpush1.bf16.msra.mxu0 %v348_v62  ;;  %v100_v26 = vld [vmem:[#allocation5 + $0x1e0] sm:$0xff]  ;;  %v422_v28 = vpack.c.bf16 %v103_v21, %v99_v20  ;;  %v102_v29 = vld [vmem:[#allocation5 + $0x1f0] sm:$0xff]  ;;  %v105_v30 = vld [vmem:[#allocation5 + $0x208] sm:$0xff] }
  0x3c   :  { %413 = vmatpush1.bf16.msra.mxu1 %v412_v63  ;;  %351 = vmatprep.subr.bf16.mxu0 %v350_v0  ;;  %v109_v31 = vld [vmem:[#allocation5 + $0x228] sm:$0xff]  ;;  %v107_v32 = vld [vmem:[#allocation5 + $0x218] sm:$0xff]  ;;  %v360_v34 = vpack.c.bf16 %v100_v26, %v96_v25  ;;  %v424_v35 = vpack.c.bf16 %v102_v29, %v98_v27  ;;  %v104_v37 = vld [vmem:[#allocation5 + $0x200] sm:$0xff] }
  0x3d   :  { %415 = vmatprep.subr.bf16.mxu1 %v414_v4  ;;  %v111_v33 = vld [vmem:[#allocation5 + $0x238] sm:$0xff]  ;;  %v362_v36 = vpack.c.bf16 %v109_v31, %v105_v30  ;;  %v108_v38 = vld [vmem:[#allocation5 + $0x220] sm:$0xff]  ;;  %v106_v39 = vld [vmem:[#allocation5 + $0x210] sm:$0xff] }
  0x3e   :  { %v426_v40 = vpack.c.bf16 %v111_v33, %v107_v32  ;;  %v110_v41 = vld [vmem:[#allocation5 + $0x230] sm:$0xff]  ;;  %v113_v42 = vld [vmem:[#allocation5 + $0x248] sm:$0xff]  ;;  %v115_v44 = vld [vmem:[#allocation5 + $0x258] sm:$0xff]  ;;  %v364_v46 = vpack.c.bf16 %v108_v38, %v104_v37 }
  0x3f   :  { %353 = vmatpush1.bf16.msra.mxu0 %v352_v10  ;;  %v117_v43 = vld [vmem:[#allocation5 + $0x268] sm:$0xff]  ;;  %v119_v45 = vld [vmem:[#allocation5 + $0x278] sm:$0xff]  ;;  %v428_v47 = vpack.c.bf16 %v110_v41, %v106_v39  ;;  %v112_v49 = vld [vmem:[#allocation5 + $0x240] sm:$0xff] }
  0x40   :  { %417 = vmatpush1.bf16.msra.mxu1 %v416_v11  ;;  %355 = vmatprep.subr.bf16.mxu0 %v354_v12  ;;  %v366_v48 = vpack.c.bf16 %v117_v43, %v113_v42  ;;  %v116_v50 = vld [vmem:[#allocation5 + $0x260] sm:$0xff]  ;;  %v114_v51 = vld [vmem:[#allocation5 + $0x250] sm:$0xff]  ;;  %v430_v52 = vpack.c.bf16 %v119_v45, %v115_v44  ;;  %v121_v54 = vld [vmem:[#allocation5 + $0x288] sm:$0xff] }
  0x41   :  { %419 = vmatprep.subr.bf16.mxu1 %v418_v16  ;;  %v118_v53 = vld [vmem:[#allocation5 + $0x270] sm:$0xff]  ;;  %v125_v55 = vld [vmem:[#allocation5 + $0x2a8] sm:$0xff]  ;;  %v123_v56 = vld [vmem:[#allocation5 + $0x298] sm:$0xff]  ;;  %v368_v58 = vpack.c.bf16 %v116_v50, %v112_v49 }
  0x42   :  { %v127_v57 = vld [vmem:[#allocation5 + $0x2b8] sm:$0xff]  ;;  %v432_v59 = vpack.c.bf16 %v118_v53, %v114_v51  ;;  %v370_v60 = vpack.c.bf16 %v125_v55, %v121_v54  ;;  %v120_v61 = vld [vmem:[#allocation5 + $0x280] sm:$0xff]  ;;  %v122_v63 = vld [vmem:[#allocation5 + $0x290] sm:$0xff] }
  0x43   :  { %357 = vmatpush1.bf16.msra.mxu0 %v356_v22  ;;  %v124_v62 = vld [vmem:[#allocation5 + $0x2a0] sm:$0xff]  ;;  %v434_v0 = vpack.c.bf16 %v127_v57, %v123_v56  ;;  %v126_v1 = vld [vmem:[#allocation5 + $0x2b0] sm:$0xff]  ;;  %v129_v2 = vld [vmem:[#allocation5 + $0x2c8] sm:$0xff] }
  0x44   :  { %421 = vmatpush1.bf16.msra.mxu1 %v420_v23  ;;  %359 = vmatprep.subr.bf16.mxu0 %v358_v24  ;;  %v133_v3 = vld [vmem:[#allocation5 + $0x2e8] sm:$0xff]  ;;  %v131_v4 = vld [vmem:[#allocation5 + $0x2d8] sm:$0xff]  ;;  %v372_v6 = vpack.c.bf16 %v124_v62, %v120_v61  ;;  %v128_v7 = vld [vmem:[#allocation5 + $0x2c0] sm:$0xff]  ;;  %v436_v8 = vpack.c.bf16 %v126_v1, %v122_v63 }
  0x45   :  { %423 = vmatprep.subr.bf16.mxu1 %v422_v28  ;;  %v135_v5 = vld [vmem:[#allocation5 + $0x2f8] sm:$0xff]  ;;  %v374_v9 = vpack.c.bf16 %v133_v3, %v129_v2  ;;  %v132_v10 = vld [vmem:[#allocation5 + $0x2e0] sm:$0xff]  ;;  %v130_v11 = vld [vmem:[#allocation5 + $0x2d0] sm:$0xff] }
  0x46   :  { %v134_v12 = vld [vmem:[#allocation5 + $0x2f0] sm:$0xff]  ;;  %v438_v13 = vpack.c.bf16 %v135_v5, %v131_v4  ;;  %v137_v14 = vld [vmem:[#allocation5 + $0x308] sm:$0xff]  ;;  %v39_v16 = vld [vmem:[#allocation2 + $0x8] sm:$0xff]  ;;  %v376_v19 = vpack.c.bf16 %v132_v10, %v128_v7 }
  0x47   :  { %361 = vmatpush1.bf16.msra.mxu0 %v360_v34  ;;  %v141_v15 = vld [vmem:[#allocation5 + $0x328] sm:$0xff]  ;;  %v139_v17 = vld [vmem:[#allocation5 + $0x318] sm:$0xff]  ;;  %232 = vmatprep.mubr.f32.mxu0 %v39_v16  ;;  %v440_v20 = vpack.c.bf16 %v134_v12, %v130_v11  ;;  %v136_v22 = vld [vmem:[#allocation5 + $0x300] sm:$0xff] }
  0x48   :  { %425 = vmatpush1.bf16.msra.mxu1 %v424_v35  ;;  %363 = vmatprep.subr.bf16.mxu0 %v362_v36  ;;  %v143_v18 = vld [vmem:[#allocation5 + $0x338] sm:$0xff]  ;;  %v378_v21 = vpack.c.bf16 %v141_v15, %v137_v14  ;;  %v140_v23 = vld [vmem:[#allocation5 + $0x320] sm:$0xff]  ;;  %v138_v24 = vld [vmem:[#allocation5 + $0x310] sm:$0xff] }
  0x49   :  { %427 = vmatprep.subr.bf16.mxu1 %v426_v40  ;;  %303 = vmatprep.mubr.f32.mxu1 %v39_v16  ;;  %v442_v25 = vpack.c.bf16 %v143_v18, %v139_v17  ;;  %v142_v26 = vld [vmem:[#allocation5 + $0x330] sm:$0xff]  ;;  %v145_v27 = vld [vmem:[#allocation5 + $0x348] sm:$0xff]  ;;  %v147_v29 = vld [vmem:[#allocation5 + $0x358] sm:$0xff]  ;;  %v380_v31 = vpack.c.bf16 %v140_v23, %v136_v22 }
  0x4a   :  { %v149_v28 = vld [vmem:[#allocation5 + $0x368] sm:$0xff]  ;;  %v151_v30 = vld [vmem:[#allocation5 + $0x378] sm:$0xff]  ;;  %v444_v32 = vpack.c.bf16 %v142_v26, %v138_v24  ;;  %v144_v34 = vld [vmem:[#allocation5 + $0x340] sm:$0xff] }
  0x4b   :  { %365 = vmatpush1.bf16.msra.mxu0 %v364_v46  ;;  %v382_v33 = vpack.c.bf16 %v149_v28, %v145_v27  ;;  %v148_v35 = vld [vmem:[#allocation5 + $0x360] sm:$0xff]  ;;  %v146_v36 = vld [vmem:[#allocation5 + $0x350] sm:$0xff]  ;;  %v446_v37 = vpack.c.bf16 %v151_v30, %v147_v29  ;;  %v153_v39 = vld [vmem:[#allocation5 + $0x388] sm:$0xff] }
  0x4c   :  { %429 = vmatpush1.bf16.msra.mxu1 %v428_v47  ;;  %367 = vmatprep.subr.bf16.mxu0 %v366_v48  ;;  %v150_v38 = vld [vmem:[#allocation5 + $0x370] sm:$0xff]  ;;  %v157_v40 = vld [vmem:[#allocation5 + $0x3a8] sm:$0xff]  ;;  %v155_v41 = vld [vmem:[#allocation5 + $0x398] sm:$0xff]  ;;  %v384_v43 = vpack.c.bf16 %v148_v35, %v144_v34 }
  0x4d   :  { %431 = vmatprep.subr.bf16.mxu1 %v430_v52  ;;  %v159_v42 = vld [vmem:[#allocation5 + $0x3b8] sm:$0xff]  ;;  %v448_v44 = vpack.c.bf16 %v150_v38, %v146_v36  ;;  %v386_v45 = vpack.c.bf16 %v157_v40, %v153_v39  ;;  %v152_v46 = vld [vmem:[#allocation5 + $0x380] sm:$0xff]  ;;  %v154_v48 = vld [vmem:[#allocation5 + $0x390] sm:$0xff] }
  0x4e   :  { %v156_v47 = vld [vmem:[#allocation5 + $0x3a0] sm:$0xff]  ;;  %v450_v49 = vpack.c.bf16 %v159_v42, %v155_v41  ;;  %v158_v50 = vld [vmem:[#allocation5 + $0x3b0] sm:$0xff]  ;;  %v161_v51 = vld [vmem:[#allocation5 + $0x3c8] sm:$0xff] }
  0x4f   :  { %369 = vmatpush1.bf16.msra.mxu0 %v368_v58  ;;  %v165_v52 = vld [vmem:[#allocation5 + $0x3e8] sm:$0xff]  ;;  %v163_v53 = vld [vmem:[#allocation5 + $0x3d8] sm:$0xff]  ;;  %v388_v55 = vpack.c.bf16 %v156_v47, %v152_v46  ;;  %v452_v56 = vpack.c.bf16 %v158_v50, %v154_v48  ;;  %v160_v58 = vld [vmem:[#allocation5 + $0x3c0] sm:$0xff] }
  0x50   :  { %433 = vmatpush1.bf16.msra.mxu1 %v432_v59  ;;  %371 = vmatprep.subr.bf16.mxu0 %v370_v60  ;;  %v167_v54 = vld [vmem:[#allocation5 + $0x3f8] sm:$0xff]  ;;  %v390_v57 = vpack.c.bf16 %v165_v52, %v161_v51  ;;  %v164_v59 = vld [vmem:[#allocation5 + $0x3e0] sm:$0xff]  ;;  %v162_v61 = vld [vmem:[#allocation5 + $0x3d0] sm:$0xff] }
  0x51   :  { %435 = vmatprep.subr.bf16.mxu1 %v434_v0  ;;  %v454_v60 = vpack.c.bf16 %v167_v54, %v163_v53  ;;  %v166_v62 = vld [vmem:[#allocation5 + $0x3f0] sm:$0xff]  ;;  %v392_v63 = vpack.c.bf16 %v164_v59, %v160_v58 }
  0x52   :  { %v456_v0 = vpack.c.bf16 %v166_v62, %v162_v61  ;;  %v38_v1 = vld [vmem:[#allocation2] sm:$0xff] }
  0x53   :  { %373 = vmatpush1.bf16.msra.mxu0 %v372_v6 }
  0x54   :  { %437 = vmatpush1.bf16.msra.mxu1 %v436_v8  ;;  %375 = vmatprep.subr.bf16.mxu0 %v374_v9 }
  0x55   :  { %439 = vmatprep.subr.bf16.mxu1 %v438_v13 }
  0x57   :  { %377 = vmatpush1.bf16.msra.mxu0 %v376_v19 }
  0x58   :  { %441 = vmatpush1.bf16.msra.mxu1 %v440_v20  ;;  %379 = vmatprep.subr.bf16.mxu0 %v378_v21 }
  0x59   :  { %443 = vmatprep.subr.bf16.mxu1 %v442_v25 }
  0x5b   :  { %381 = vmatpush1.bf16.msra.mxu0 %v380_v31 }
  0x5c   :  { %445 = vmatpush1.bf16.msra.mxu1 %v444_v32  ;;  %383 = vmatprep.subr.bf16.mxu0 %v382_v33 }
  0x5d   :  { %447 = vmatprep.subr.bf16.mxu1 %v446_v37 }
  0x5f   :  { %385 = vmatpush1.bf16.msra.mxu0 %v384_v43 }
  0x60   :  { %449 = vmatpush1.bf16.msra.mxu1 %v448_v44  ;;  %387 = vmatprep.subr.bf16.mxu0 %v386_v45 }
  0x61   :  { %451 = vmatprep.subr.bf16.mxu1 %v450_v49 }
  0x63   :  { %389 = vmatpush1.bf16.msra.mxu0 %v388_v55 }
  0x64   :  { %453 = vmatpush1.bf16.msra.mxu1 %v452_v56  ;;  %391 = vmatprep.subr.bf16.mxu0 %v390_v57 }
  0x65   :  { %455 = vmatprep.subr.bf16.mxu1 %v454_v60 }
  0x67   :  { %393 = vmatpush1.bf16.msra.mxu0 %v392_v63 }
  0x68   :  { %457 = vmatpush1.bf16.msra.mxu1 %v456_v0 }
  0x6a   :  { %233 = vmatmul.mubr.f32.vlgmr.msra.gmra.mrb[0].mxu0 %v38_v1 }
  0x6b   :  { %304 = vmatmul.mubr.f32.vlgmr.msra.gmra.mrb[0].mxu1 %v38_v1 }
 0x13d   :  { %v234_v2 = vpop.f32.mrb[0].mxu0 }
 0x13e   :  { %310 = vst [vmem:[#allocation7] sm:$0xff] %v234_v2  ;;  %v305_v3 = vpop.f32.mrb[0].mxu1  ;;  %v236_v4 = vpop.f32.mrb[1].mxu0 }
 0x13f   :  { %312 = vst [vmem:[#allocation7 + $0x10] sm:$0xff] %v305_v3  ;;  %311 = vst [vmem:[#allocation7 + $0x8] sm:$0xff] %v236_v4  ;;  %v307_v5 = vpop.f32.mrb[1].mxu1 }
 0x140   :  { %313 = vst [vmem:[#allocation7 + $0x18] sm:$0xff] %v307_v5 }
 0x141   :  { %518 = shalt.err (!%p515_p6)
}
 0x142   :  { %s519_s10 = scalar_lea.hbm %s600_s2, 512 }
 0x143   :  { %p520_p7 = scmp.ne.s32.totalorder %s600_s2, %s519_s10  ;;  %p523_p8 = scmp.lt.u32.totalorder %s519_s10, %s600_s2 }
 0x145   :  { %p525_p9 = pnand %p523_p8, %p520_p7 }
 0x147   :  { %528 = shalt.err (!%p525_p9)
}
 0x148   :  { %323 = dma.vmem_to_hbm [thread:$0]  %s321_s6, 512, %s600_s2, [#allocation4]  }
 0x149   :  { %533 = dma.done.wait [#allocation4], 512  }
 0x14a   :  { %534 = vsyncadd [#allocation4], 4294966784 }
 0x14b   :  { %327 = vsyncpa [#allocation3], 1 }
 0x14c   :  { %328 = vsyncpa [#allocation6], 1 }
 0x14d   :  { %329 = vsyncpa [#allocation4], 1 }

</bundles_post_ra>
